<compile_context>
chip_gen: v6e
topology: v6e:2x2x1
jax: 0.10.0
libtpu: 0.0.40
codegen_flags: <defaults>
</compile_context>

<pallas_src>
import jax
import jax.numpy as jnp
from jax.experimental import pallas as pl
from jax.experimental.pallas import tpu as pltpu


def _round_up(n, m):
    return ((n + m - 1) // m) * m


def _default_num_batch_tiles():
    """grid=(1,) on single-TC chips (v5e/v6e); 2 parallel steps on v7x."""
    try:
        kind = jax.devices()[0].device_kind.lower()
    except Exception:
        return 1
    return 2 if "v7" in kind else 1


def _mlp_kernel(x_ref, w1_ref, b1_ref, w2_ref, b2_ref, w3_ref, b3_ref, o_ref):
    # Cast activations to bf16 in VMEM (fold the cast into the kernel).
    x = x_ref[...].astype(jnp.bfloat16)
    # Layer 1: Linear + ReLU   (Dropout is identity at inference)
    h1 = jnp.dot(x, w1_ref[...], preferred_element_type=jnp.float32)
    h1 = jnp.maximum(h1 + b1_ref[...], 0.0)
    # Layer 2: Linear + ReLU
    h2 = jnp.dot(h1.astype(jnp.bfloat16), w2_ref[...],
                 preferred_element_type=jnp.float32)
    h2 = jnp.maximum(h2 + b2_ref[...], 0.0)
    # Layer 3: Linear + Sigmoid (narrow 8-lane output written directly)
    logits = jnp.dot(h2.astype(jnp.bfloat16), w3_ref[...],
                     preferred_element_type=jnp.float32)
    o_ref[...] = jax.nn.sigmoid(logits + b3_ref[...]).astype(o_ref.dtype)


def prepack_params(params):
    """One-time weight preprocessing: bf16 MXU operands, f32 biases.

    Keeps the per-call forward path free of cast/pad ops.
    """
    return dict(
        w1=params["w1"].astype(jnp.bfloat16),
        b1=params["b1"].astype(jnp.float32),
        w2=params["w2"].astype(jnp.bfloat16),
        b2=params["b2"].astype(jnp.float32),
        w3=params["w3"].astype(jnp.bfloat16),
        b3=params["b3"].astype(jnp.float32),
    )


def multi_label_dnn_forward(x, packed, *, num_batch_tiles=None):
    """Fused forward pass of MultiLabelDNN.

    x: [B, input_size] float32
    packed: prepack_params() output -- w1 [in,h1] bf16, b1 [1,h1] f32,
            w2 [h1,h2] bf16, b2 [1,h2] f32, w3 [h2,out] bf16, b3 [1,out] f32.
    """
    w1, b1 = packed["w1"], packed["b1"]
    w2, b2 = packed["w2"], packed["b2"]
    w3, b3 = packed["w3"], packed["b3"]

    B, in_dim = x.shape
    h1_dim = w1.shape[1]
    h2_dim = w2.shape[1]
    out_dim = w3.shape[1]

    if num_batch_tiles is None:
        num_batch_tiles = _default_num_batch_tiles()

    # Balanced batch tiles, sublane-aligned (multiple of 8); grid=(1,) unless
    # we want both v7x TensorCores working.
    block_b = _round_up(pl.cdiv(B, num_batch_tiles), 8)
    B_pad = block_b * num_batch_tiles
    if B_pad != B:
        x = jnp.pad(x, ((0, B_pad - B), (0, 0)))

    cost = pl.CostEstimate(
        flops=2 * B_pad * (in_dim * h1_dim + h1_dim * h2_dim + h2_dim * out_dim),
        transcendentals=B_pad * out_dim,
        bytes_accessed=(
            B_pad * in_dim * 4                              # x (f32 in)
            + (in_dim * h1_dim + h1_dim * h2_dim + h2_dim * out_dim) * 2  # bf16 W
            + (h1_dim + h2_dim + out_dim) * 4               # f32 biases
            + B_pad * out_dim * 4                           # f32 out
        ),
    )

    out_padded = pl.pallas_call(
        _mlp_kernel,
        out_shape=jax.ShapeDtypeStruct((B_pad, out_dim), jnp.float32),
        grid_spec=pltpu.PrefetchScalarGridSpec(
            num_scalar_prefetch=0,
            grid=(num_batch_tiles,),
            in_specs=[
                # batch tile of activations (f32; cast to bf16 in-kernel)
                pl.BlockSpec((block_b, in_dim), lambda i: (i, 0)),
                # weights / biases: constant index_map -> resident in VMEM
                pl.BlockSpec((in_dim, h1_dim), lambda i: (0, 0)),
                pl.BlockSpec((1, h1_dim), lambda i: (0, 0)),
                pl.BlockSpec((h1_dim, h2_dim), lambda i: (0, 0)),
                pl.BlockSpec((1, h2_dim), lambda i: (0, 0)),
                pl.BlockSpec((h2_dim, out_dim), lambda i: (0, 0)),
                pl.BlockSpec((1, out_dim), lambda i: (0, 0)),
            ],
            out_specs=pl.BlockSpec((block_b, out_dim), lambda i: (i, 0)),
        ),
        compiler_params=pltpu.CompilerParams(
            dimension_semantics=("parallel",)),
        cost_estimate=cost,
    )(x, w1, b1, w2, b2, w3, b3)

    return out_padded[:B]


def init_params(key, input_size, output_size, hidden_sizes=(256, 128)):
    """Deterministic synthetic parameter init (matching nn.Linear shapes,
    stored transposed as [in, out]), all float32."""
    k1, k2, k3, k4, k5, k6 = jax.random.split(key, 6)
    h1, h2 = hidden_sizes

    def lin(kw, kb, fan_in, fan_out):
        bound = 1.0 / jnp.sqrt(fan_in)
        w = jax.random.uniform(kw, (fan_in, fan_out), jnp.float32, -bound, bound)
        b = jax.random.uniform(kb, (1, fan_out), jnp.float32, -bound, bound)
        return w, b

    w1, b1 = lin(k1, k2, input_size, h1)
    w2, b2 = lin(k3, k4, h1, h2)
    w3, b3 = lin(k5, k6, h2, output_size)
    return dict(w1=w1, b1=b1, w2=w2, b2=b2, w3=w3, b3=b3)


if __name__ == "__main__":
    INPUT_SIZE = 32
    OUTPUT_SIZE = 8
    HIDDEN = (256, 128)
    BATCH = 100          # non-multiple-of-8 batch: exercises the padding path

    key = jax.random.PRNGKey(0)
    kx, kp = jax.random.split(key)
    x = jax.random.normal(kx, (BATCH, INPUT_SIZE), dtype=jnp.float32)
    params = init_params(kp, INPUT_SIZE, OUTPUT_SIZE, HIDDEN)

    # One-time prepack (weight casts hoisted out of the per-call path).
    packed = prepack_params(params)

    fwd = jax.jit(multi_label_dnn_forward)
    out = jax.block_until_ready(fwd(x, packed))

    # Pure-JAX f32 reference (Dropout is identity at inference).
    # Tolerance loosened because the kernel uses bf16 MXU operands with f32
    # accumulation; sigmoid outputs are in [0,1] so abs tol is meaningful.
    h1 = jnp.maximum(x @ params["w1"] + params["b1"], 0.0)
    h2 = jnp.maximum(h1 @ params["w2"] + params["b2"], 0.0)
    ref = jax.nn.sigmoid(h2 @ params["w3"] + params["b3"])

    assert out.shape == (BATCH, OUTPUT_SIZE), out.shape
    assert jnp.all(jnp.isfinite(out))
    assert jnp.allclose(out, ref, atol=1.5e-2, rtol=0.0), (
        float(jnp.max(jnp.abs(out - ref))))

    print("KERNEL_OK")
</pallas_src>

<mosaic_0001>
module attributes {stable_mosaic.version = 11 : i64} {
  func.func @_mlp_kernel(%arg0: i32, %arg1: memref<104x32xf32, #tpu.memory_space<vmem>>, %arg2: memref<32x256xbf16, #tpu.memory_space<vmem>>, %arg3: memref<1x256xf32, #tpu.memory_space<vmem>>, %arg4: memref<256x128xbf16, #tpu.memory_space<vmem>>, %arg5: memref<1x128xf32, #tpu.memory_space<vmem>>, %arg6: memref<128x8xbf16, #tpu.memory_space<vmem>>, %arg7: memref<1x8xf32, #tpu.memory_space<vmem>>, %arg8: memref<104x8xf32, #tpu.memory_space<vmem>>) attributes {dimension_semantics = [#tpu.dimension_semantics<parallel>], iteration_bounds = array<i64: 1>, scalar_prefetch = 0 : i64, scratch_operands = 0 : i64, tpu.core_type = #tpu.core_type<tc>, window_params = [{transform_indices = @transform_0, window_bounds = array<i64: 104, 32>}, {pipeline_mode = #tpu.pipeline_mode<synchronous>, transform_indices = @transform_1, window_bounds = array<i64: 32, 256>}, {pipeline_mode = #tpu.pipeline_mode<synchronous>, transform_indices = @transform_2, window_bounds = array<i64: 1, 256>}, {pipeline_mode = #tpu.pipeline_mode<synchronous>, transform_indices = @transform_3, window_bounds = array<i64: 256, 128>}, {pipeline_mode = #tpu.pipeline_mode<synchronous>, transform_indices = @transform_4, window_bounds = array<i64: 1, 128>}, {pipeline_mode = #tpu.pipeline_mode<synchronous>, transform_indices = @transform_5, window_bounds = array<i64: 128, 8>}, {pipeline_mode = #tpu.pipeline_mode<synchronous>, transform_indices = @transform_6, window_bounds = array<i64: 1, 8>}, {transform_indices = @transform_7, window_bounds = array<i64: 104, 8>}]} {
    %c0 = arith.constant 0 : index
    %c0_0 = arith.constant 0 : index
    %0 = vector.load %arg1[%c0, %c0_0] : memref<104x32xf32, #tpu.memory_space<vmem>>, vector<104x32xf32>
    %1 = arith.truncf %0 : vector<104x32xf32> to vector<104x32xbf16>
    %c0_1 = arith.constant 0 : index
    %c0_2 = arith.constant 0 : index
    %2 = vector.load %arg2[%c0_1, %c0_2] : memref<32x256xbf16, #tpu.memory_space<vmem>>, vector<32x256xbf16>
    %cst = arith.constant dense<0.000000e+00> : vector<104x256xf32>
    %3 = tpu.matmul %1, %2, %cst {dimension_numbers = #tpu.dot_dimension_numbers<[1], [0], [0], [1], [0, 0, 1, 1], [], []>} : vector<104x32xbf16>, vector<32x256xbf16>, vector<104x256xf32> -> vector<104x256xf32>
    %c0_3 = arith.constant 0 : index
    %c0_4 = arith.constant 0 : index
    %4 = vector.load %arg3[%c0_3, %c0_4] : memref<1x256xf32, #tpu.memory_space<vmem>>, vector<1x256xf32>
    %5 = vector.broadcast %4 : vector<1x256xf32> to vector<104x256xf32>
    %6 = arith.addf %3, %5 : vector<104x256xf32>
    %cst_5 = arith.constant 0.000000e+00 : f32
    %7 = vector.broadcast %cst_5 : f32 to vector<104x256xf32>
    %8 = arith.maximumf %6, %7 : vector<104x256xf32>
    %9 = arith.truncf %8 : vector<104x256xf32> to vector<104x256xbf16>
    %c0_6 = arith.constant 0 : index
    %c0_7 = arith.constant 0 : index
    %10 = vector.load %arg4[%c0_6, %c0_7] : memref<256x128xbf16, #tpu.memory_space<vmem>>, vector<256x128xbf16>
    %cst_8 = arith.constant dense<0.000000e+00> : vector<104x128xf32>
    %11 = tpu.matmul %9, %10, %cst_8 {dimension_numbers = #tpu.dot_dimension_numbers<[1], [0], [0], [1], [0, 0, 1, 1], [], []>} : vector<104x256xbf16>, vector<256x128xbf16>, vector<104x128xf32> -> vector<104x128xf32>
    %c0_9 = arith.constant 0 : index
    %c0_10 = arith.constant 0 : index
    %12 = vector.load %arg5[%c0_9, %c0_10] : memref<1x128xf32, #tpu.memory_space<vmem>>, vector<1x128xf32>
    %13 = vector.broadcast %12 : vector<1x128xf32> to vector<104x128xf32>
    %14 = arith.addf %11, %13 : vector<104x128xf32>
    %cst_11 = arith.constant 0.000000e+00 : f32
    %15 = vector.broadcast %cst_11 : f32 to vector<104x128xf32>
    %16 = arith.maximumf %14, %15 : vector<104x128xf32>
    %17 = arith.truncf %16 : vector<104x128xf32> to vector<104x128xbf16>
    %c0_12 = arith.constant 0 : index
    %c0_13 = arith.constant 0 : index
    %18 = vector.load %arg6[%c0_12, %c0_13] : memref<128x8xbf16, #tpu.memory_space<vmem>>, vector<128x8xbf16>
    %cst_14 = arith.constant dense<0.000000e+00> : vector<104x8xf32>
    %19 = tpu.matmul %17, %18, %cst_14 {dimension_numbers = #tpu.dot_dimension_numbers<[1], [0], [0], [1], [0, 0, 1, 1], [], []>} : vector<104x128xbf16>, vector<128x8xbf16>, vector<104x8xf32> -> vector<104x8xf32>
    %c0_15 = arith.constant 0 : index
    %c0_16 = arith.constant 0 : index
    %20 = vector.load %arg7[%c0_15, %c0_16] : memref<1x8xf32, #tpu.memory_space<vmem>>, vector<1x8xf32>
    %21 = vector.broadcast %20 : vector<1x8xf32> to vector<104x8xf32>
    %22 = arith.addf %19, %21 : vector<104x8xf32>
    %23 = arith.negf %22 : vector<104x8xf32>
    %24 = math.exp %23 : vector<104x8xf32>
    %cst_17 = arith.constant 1.000000e+00 : f32
    %25 = vector.broadcast %cst_17 : f32 to vector<104x8xf32>
    %26 = arith.addf %25, %24 : vector<104x8xf32>
    %27 = arith.divf %25, %26 : vector<104x8xf32>
    %c0_18 = arith.constant 0 : index
    %c0_19 = arith.constant 0 : index
    %28 = vector.load %arg8[%c0_18, %c0_19] : memref<104x8xf32, #tpu.memory_space<vmem>>, vector<104x8xf32>
    tpu.vector_store %arg8[%c0_18, %c0_19], %27 {strides = array<i32>} : memref<104x8xf32, #tpu.memory_space<vmem>>, vector<104x8xf32>,
    return
  }
  func.func @transform_0(%arg0: i32) -> (i32, i32) {
    %c0_i32 = arith.constant 0 : i32
    %c0_i32_0 = arith.constant 0 : i32
    return %arg0, %c0_i32 : i32, i32
  }
  func.func @transform_1(%arg0: i32) -> (i32, i32) {
    %c0_i32 = arith.constant 0 : i32
    %c0_i32_0 = arith.constant 0 : i32
    %c0_i32_1 = arith.constant 0 : i32
    return %c0_i32, %c0_i32_0 : i32, i32
  }
  func.func @transform_2(%arg0: i32) -> (i32, i32) {
    %c0_i32 = arith.constant 0 : i32
    %c0_i32_0 = arith.constant 0 : i32
    %c0_i32_1 = arith.constant 0 : i32
    return %c0_i32, %c0_i32_0 : i32, i32
  }
  func.func @transform_3(%arg0: i32) -> (i32, i32) {
    %c0_i32 = arith.constant 0 : i32
    %c0_i32_0 = arith.constant 0 : i32
    %c0_i32_1 = arith.constant 0 : i32
    return %c0_i32, %c0_i32_0 : i32, i32
  }
  func.func @transform_4(%arg0: i32) -> (i32, i32) {
    %c0_i32 = arith.constant 0 : i32
    %c0_i32_0 = arith.constant 0 : i32
    %c0_i32_1 = arith.constant 0 : i32
    return %c0_i32, %c0_i32_0 : i32, i32
  }
  func.func @transform_5(%arg0: i32) -> (i32, i32) {
    %c0_i32 = arith.constant 0 : i32
    %c0_i32_0 = arith.constant 0 : i32
    %c0_i32_1 = arith.constant 0 : i32
    return %c0_i32, %c0_i32_0 : i32, i32
  }
  func.func @transform_6(%arg0: i32) -> (i32, i32) {
    %c0_i32 = arith.constant 0 : i32
    %c0_i32_0 = arith.constant 0 : i32
    %c0_i32_1 = arith.constant 0 : i32
    return %c0_i32, %c0_i32_0 : i32, i32
  }
  func.func @transform_7(%arg0: i32) -> (i32, i32) {
    %c0_i32 = arith.constant 0 : i32
    %c0_i32_0 = arith.constant 0 : i32
    return %arg0, %c0_i32 : i32, i32
  }
}

</mosaic_0001>

<bundles_post_ra>
// kernel: multi_label_dnn_forward.1
= control target key start
LH: loop header
LB: loop body
LE: loop exit
PB: predicated region body
PF: predicated region fallthrough
CT: control target
= control target key end

     0   :  { %v1000_v1 = vmov 0   ;;  %vm83_vm0 = vcmask 261120   ;;  %v1001_v41 = vmov 0.0   ;;  %v53_v47 = vlaneseq  ;;  %s1338_s1 = inlined_call_operand.vmem [shape: bf16[32,256], index: 1, kind: input, shape index: {}]   ;;  %s1339_s0 = inlined_call_operand.vmem [shape: f32[104,32], index: 0, kind: input, shape index: {}]   ;;  %s1340_s3 = inlined_call_operand.vmem [shape: bf16[256,128], index: 3, kind: input, shape index: {}]   ;;  %s1341_s5 = inlined_call_operand.vmem [shape: bf16[128,8], index: 5, kind: input, shape index: {}]   ;;  %s1342_s2 = inlined_call_operand.vmem [shape: f32[1,256], index: 2, kind: input, shape index: {}]   ;;  %s1343_s4 = inlined_call_operand.vmem [shape: f32[1,128], index: 4, kind: input, shape index: {}]   ;;  %s1344_s6 = inlined_call_operand.vmem [shape: f32[1,8], index: 6, kind: input, shape index: {}]   ;;  %s1345_s7 = inlined_call_operand.vmem [shape: f32[104,8], index: 7, kind: output, shape index: {}]  }
   0x1   :  { %v918_v0 = vld [vmem:[%s1338_s1 + $0x14] ss:$8 sps:$4 sm:$0xff]   ;;  %137 = vmatprep.mubr.bf16.mxu0 %v1000_v1  ;;  %177 = vmatprep.mubr.bf16.mxu1 %v1000_v1  ;;  %v920_v2 = vld [vmem:[%s1338_s1 + $0x10] ss:$8 sps:$4 sm:$0xff]   ;;  %v921_v3 = vld [vmem:[%s1338_s1 + $0x4] ss:$8 sps:$4 sm:$0xff]  }
   0x2   :  { %117 = vmatprep.subr.bf16.mxu0 %v918_v0  ;;  %911 = vmatprep.subr.bf16.mxu1 %v918_v0  ;;  %v923_v4 = vld [vmem:[%s1338_s1] ss:$8 sps:$4 sm:$0xff]   ;;  %v924_v11 = vld [vmem:[%s1340_s3 + $0x78] sm:$0xff]   ;;  %v29_v13 = vld [vmem:[%s1339_s0 + $0x10] sm:$0xff]  ;;  %v54_v48 = vshrl.u32 %v53_v47, 7  ;;  %vm1002_vm1 = vmmov 0  }
   0x3   :  { %118 = vmatpush1.bf16.msra.mxu0 %v920_v2  ;;  %v27_v5 = vld [vmem:[%s1339_s0] sm:$0xff]  ;;  %v28_v6 = vld [vmem:[%s1339_s0 + $0x8] sm:$0xff]  ;;  %913 = vmatpush1.bf16.msra.mxu1 %v920_v2  ;;  %v925_v12 = vld [vmem:[%s1340_s3 + $0x38] sm:$0xff]   ;;  %vm726_vm2 = vcmask 64512  }
   0x4   :  { %119 = vmatprep.subr.bf16.mxu0 %v921_v3  ;;  %912 = vmatprep.subr.bf16.mxu1 %v921_v3  ;;  %v35_v7 = vld [vmem:[%s1339_s0 + $0x40] sm:$0xff]  ;;  %v36_v8 = vld [vmem:[%s1339_s0 + $0x48] sm:$0xff]  ;;  %v40_v9 = vpack.c.bf16 %v28_v6, %v27_v5  ;;  %v30_v14 = vld [vmem:[%s1339_s0 + $0x18] sm:$0xff]  ;;  %v59_v49 = vsub.s32 1, %v54_v48  ;;  %v55_v50 = vsub.s32 0, %v54_v48 }
   0x5   :  { %v44_v10 = vpack.c.bf16 %v36_v8, %v35_v7  ;;  %v926_v15 = vld [vmem:[%s1340_s3 + $0x70] sm:$0xff]   ;;  %v38_v17 = vld [vmem:[%s1339_s0 + $0x58] sm:$0xff]  ;;  %v928_v19 = vld [vmem:[%s1340_s3 + $0x68] sm:$0xff]   ;;  %v41_v20 = vpack.c.bf16 %v30_v14, %v29_v13 }
   0x6   :  { %v37_v16 = vld [vmem:[%s1339_s0 + $0x50] sm:$0xff]  ;;  %v929_v22 = vld [vmem:[%s1340_s3 + $0x28] sm:$0xff]   ;;  %v31_v23 = vld [vmem:[%s1339_s0 + $0x20] sm:$0xff] }
   0x7   :  { %120 = vmatpush1.bf16.msra.mxu0 %v923_v4  ;;  %914 = vmatpush1.bf16.msra.mxu1 %v923_v4  ;;  %v927_v18 = vld [vmem:[%s1340_s3 + $0x30] sm:$0xff]   ;;  %v45_v21 = vpack.c.bf16 %v38_v17, %v37_v16  ;;  %v32_v24 = vld [vmem:[%s1339_s0 + $0x28] sm:$0xff]  ;;  %v39_v25 = vld [vmem:[%s1339_s0 + $0x60] sm:$0xff] }
   0x8   :  { %794 = vmatprep.subr.bf16.mxu1 %v924_v11  ;;  %v930_v26 = vld [vmem:[%s1340_s3 + $0x60] sm:$0xff]   ;;  %v932_v28 = vld [vmem:[%s1340_s3 + $0x58] sm:$0xff]   ;;  %v42_v29 = vpack.c.bf16 %v32_v24, %v31_v23  ;;  %v46_v30 = vpack.c.bf16 %v39_v25, %v39_v25  ;;  %v33_v32 = vld [vmem:[%s1339_s0 + $0x30] sm:$0xff]  ;;  %867 = vmatprep.subr.bf16.mxu0 %v1001_v41 }
   0x9   :  { %v931_v27 = vld [vmem:[%s1340_s3 + $0x20] sm:$0xff]   ;;  %v933_v31 = vld [vmem:[%s1340_s3 + $0x18] sm:$0xff]   ;;  %v934_v35 = vld [vmem:[%s1340_s3 + $0x50] sm:$0xff]  }
   0xa   :  { %748 = vmatmul.mubr.msk.bf16.vlgmr.msra.gmra.mxu0 %vm83_vm0, %v40_v9  ;;  %752 = vmatmul.mubr.msk.bf16.vlgmr.msra.gmra.mxu1 %vm83_vm0, %v44_v10  ;;  %v34_v33 = vld [vmem:[%s1339_s0 + $0x38] sm:$0xff]  ;;  %v935_v36 = vld [vmem:[%s1340_s3 + $0x10] sm:$0xff]   ;;  %v936_v37 = vld [vmem:[%s1340_s3 + $0x48] sm:$0xff]  }
   0xb   :  { %147 = vmatprep.mubr.bf16.mxu0 %v1000_v1  ;;  %187 = vmatprep.mubr.bf16.mxu1 %v1000_v1  ;;  %v43_v34 = vpack.c.bf16 %v34_v33, %v33_v32  ;;  %v937_v38 = vld [vmem:[%s1340_s3 + $0x8] sm:$0xff]   ;;  %v938_v39 = vld [vmem:[%s1340_s3 + $0x40] sm:$0xff]   ;;  %v940_v42 = vld [vmem:[%s1341_s5 + $0x38] sm:$0xff]  }
   0xc   :  { %795 = vmatpush3.bf16.msra.mxu1 %v925_v12  ;;  %v939_v40 = vld [vmem:[%s1340_s3] sm:$0xff]   ;;  %868 = vmatpush3.bf16.msra.mxu0 %v940_v42  ;;  %v941_v43 = vld [vmem:[%s1341_s5 + $0x30] sm:$0xff]   ;;  %v942_v44 = vld [vmem:[%s1341_s5 + $0x28] sm:$0xff]  }
   0xd   :  { %796 = vmatprep.subr.bf16.mxu1 %v926_v15  ;;  %869 = vmatprep.subr.bf16.mxu0 %v1001_v41  ;;  %v943_v45 = vld [vmem:[%s1341_s5 + $0x20] sm:$0xff]   ;;  %v944_v46 = vld [vmem:[%s1341_s5 + $0x18] sm:$0xff]  }
   0xe   :  { %v51_v51 = vld [vmem:[%s1342_s2] sm:$0x3] }
   0xf   :  { %v1182_v54 = vrot.slane %v51_v51, %v59_v49  ;;  %v1184_v55 = vrot.slane %v51_v51, %v55_v50 }
  0x10   :  { %797 = vmatpush3.bf16.msra.mxu1 %v927_v18  ;;  %870 = vmatpush3.bf16.msra.mxu0 %v941_v43 }
  0x11   :  { %798 = vmatprep.subr.bf16.mxu1 %v928_v19  ;;  %871 = vmatprep.subr.bf16.mxu0 %v1001_v41 }
  0x12   :  { %749 = vmatmul.mubr.msk.bf16.gmra.mxu0 %vm83_vm0, %v41_v20  ;;  %753 = vmatmul.mubr.msk.bf16.gmra.mxu1 %vm83_vm0, %v45_v21 }
  0x13   :  { %157 = vmatprep.mubr.bf16.mxu0 %v1000_v1  ;;  %197 = vmatprep.mubr.bf16.mxu1 %v1000_v1 }
  0x14   :  { %799 = vmatpush3.bf16.msra.mxu1 %v929_v22  ;;  %872 = vmatpush3.bf16.msra.mxu0 %v942_v44 }
  0x15   :  { %800 = vmatprep.subr.bf16.mxu1 %v930_v26  ;;  %873 = vmatprep.subr.bf16.mxu0 %v1001_v41 }
  0x18   :  { %801 = vmatpush3.bf16.msra.mxu1 %v931_v27  ;;  %874 = vmatpush3.bf16.msra.mxu0 %v943_v45 }
  0x19   :  { %802 = vmatprep.subr.bf16.mxu1 %v932_v28  ;;  %875 = vmatprep.subr.bf16.mxu0 %v1001_v41 }
  0x1a   :  { %750 = vmatmul.mubr.msk.bf16.gmra.mxu0 %vm83_vm0, %v42_v29  ;;  %754 = vmatmul.mubr.msk.bf16.gmra.mxu1 %vm83_vm0, %v46_v30 }
  0x1b   :  { %167 = vmatprep.mubr.bf16.mxu0 %v1000_v1 }
  0x1c   :  { %803 = vmatpush3.bf16.msra.mxu1 %v933_v31  ;;  %876 = vmatpush3.bf16.msra.mxu0 %v944_v46 }
  0x1d   :  { %804 = vmatprep.subr.bf16.mxu1 %v934_v35  ;;  %877 = vmatprep.subr.bf16.mxu0 %v1001_v41 }
  0x20   :  { %805 = vmatpush3.bf16.msra.mxu1 %v935_v36 }
  0x21   :  { %806 = vmatprep.subr.bf16.mxu1 %v936_v37 }
  0x22   :  { %751 = vmatmul.mubr.msk.bf16.gmra.mxu0 %vm83_vm0, %v43_v34 }
  0x23   :  { %883 = vmatprep.mubr.msk.bf16.mxu0 %vm1002_vm1, %v1001_v41 }
  0x24   :  { %807 = vmatpush3.bf16.msra.mxu1 %v937_v38 }
  0x25   :  { %808 = vmatprep.subr.bf16.mxu1 %v938_v39 }
  0x28   :  { %809 = vmatpush3.bf16.msra.mxu1 %v939_v40 }
  0xca   :  { %v139_v52 = vpop.f32.mrf.mxu0  ;;  %v1180_v53 = vpop.f32.mrf.mxu1 }
  0xcb   :  { %v140_v62 = vadd.f32 %v139_v52, %v1184_v55 }
  0xcc   :  { %v141_v56 = vpop.f32.mrf.mxu0  ;;  %v181_v57 = vpop.f32.mrf.mxu1 }
  0xcd   :  { %v142_v60 = vadd.f32 %v141_v56, %v1182_v54  ;;  %v206_v7 = vmax.f32 %v140_v62, 0.0  ;;  %v182_v46 = vadd.f32 %v181_v57, %v1182_v54 }
  0xce   :  { %v143_v58 = vpop.f32.mrf.mxu0  ;;  %v1186_v59 = vpop.f32.mrf.mxu1 }
  0xcf   :  { %v144_v61 = vadd.f32 %v143_v58, %v1184_v55  ;;  %v207_v5 = vmax.f32 %v142_v60, 0.0  ;;  %v223_v58 = vmax.f32 %v182_v46, 0.0 }
  0xd0   :  { %v145_v63 = vpop.f32.mrf.mxu0  ;;  %v185_v0 = vpop.f32.mrf.mxu1 }
  0xd1   :  { %v146_v1 = vadd.f32 %v145_v63, %v1182_v54  ;;  %v208_v2 = vmax.f32 %v144_v61, 0.0  ;;  %v186_v47 = vadd.f32 %v185_v0, %v1182_v54 }
  0xd2   :  { %v149_v3 = vpop.f32.mrf.mxu0  ;;  %v1192_v4 = vpop.f32.mrf.mxu1 }
  0xd3   :  { %v209_v6 = vmax.f32 %v146_v1, 0.0  ;;  %v232_v11 = vpack.c.bf16 %v208_v2, %v206_v7  ;;  %v150_v16 = vadd.f32 %v149_v3, %v1184_v55  ;;  %v225_v61 = vmax.f32 %v186_v47, 0.0 }
  0xd4   :  { %v151_v8 = vpop.f32.mrf.mxu0  ;;  %v191_v9 = vpop.f32.mrf.mxu1 }
  0xd5   :  { %v233_v10 = vpack.c.bf16 %v209_v6, %v207_v5  ;;  %v152_v14 = vadd.f32 %v151_v8, %v1182_v54  ;;  %v210_v25 = vmax.f32 %v150_v16, 0.0  ;;  %v241_v2 = vpack.c.bf16 %v225_v61, %v223_v58 }
  0xd6   :  { %v153_v12 = vpop.f32.mrf.mxu0  ;;  %v1194_v13 = vpop.f32.mrf.mxu1  ;;  %v192_v3 = vadd.f32 %v191_v9, %v1182_v54  ;;  %v180_v6 = vadd.f32 %v1180_v53, %v1184_v55  ;;  %v184_v8 = vadd.f32 %v1186_v59, %v1184_v55 }
  0xd7   :  { %v154_v15 = vadd.f32 %v153_v12, %v1184_v55  ;;  %413 = vmatprep.mubr.bf16.mxu1 %v233_v10  ;;  %v211_v23 = vmax.f32 %v152_v14, 0.0  ;;  %v194_v53 = vadd.f32 %v1194_v13, %v1184_v55  ;;  %v946_v13 = vld [vmem:[%s1341_s5 + $0x8] sm:$0xff]  }
  0xd8   :  { %v155_v17 = vpop.f32.mrf.mxu0  ;;  %414 = vmatmul.mubr.bf16.vlgmr.msra.gmra.mxu1 %v232_v11  ;;  %v195_v18 = vpop.f32.mrf.mxu1  ;;  %v227_v10 = vmax.f32 %v192_v3, 0.0  ;;  %v222_v12 = vmax.f32 %v180_v6, 0.0  ;;  %v224_v14 = vmax.f32 %v184_v8, 0.0 }
  0xd9   :  { %v156_v19 = vadd.f32 %v155_v17, %v1182_v54  ;;  %v212_v20 = vmax.f32 %v154_v15, 0.0  ;;  %v196_v5 = vadd.f32 %v195_v18, %v1182_v54  ;;  %v190_v17 = vadd.f32 %v1192_v4, %v1184_v55  ;;  %v945_v4 = vld [vmem:[%s1341_s5 + $0x10] sm:$0xff]  }
  0xda   :  { %v159_v21 = vpop.f32.mrf.mxu0  ;;  %v1200_v22 = vpop.f32.mrf.mxu1  ;;  %v240_v9 = vpack.c.bf16 %v224_v14, %v222_v12  ;;  %878 = vmatpush3.bf16.msra.mxu0 %v945_v4 }
  0xdb   :  { %v213_v24 = vmax.f32 %v156_v19, 0.0  ;;  %v234_v29 = vpack.c.bf16 %v212_v20, %v210_v25  ;;  %v160_v34 = vadd.f32 %v159_v21, %v1184_v55  ;;  %v229_v11 = vmax.f32 %v196_v5, 0.0  ;;  %879 = vmatprep.subr.bf16.mxu0 %v1001_v41 }
  0xdc   :  { %v161_v26 = vpop.f32.mrf.mxu0  ;;  %v201_v27 = vpop.f32.mrf.mxu1  ;;  %v226_v18 = vmax.f32 %v190_v17, 0.0  ;;  %v228_v19 = vmax.f32 %v194_v53, 0.0  ;;  %v200_v20 = vadd.f32 %v1200_v22, %v1184_v55 }
  0xdd   :  { %v235_v28 = vpack.c.bf16 %v213_v24, %v211_v23  ;;  %v162_v32 = vadd.f32 %v161_v26, %v1182_v54  ;;  %v214_v43 = vmax.f32 %v160_v34, 0.0  ;;  %v243_v15 = vpack.c.bf16 %v229_v11, %v227_v10 }
  0xde   :  { %v163_v30 = vpop.f32.mrf.mxu0  ;;  %v203_v31 = vpop.f32.mrf.mxu1  ;;  %v202_v16 = vadd.f32 %v201_v27, %v1182_v54  ;;  %v242_v23 = vpack.c.bf16 %v228_v19, %v226_v18  ;;  %v230_v24 = vmax.f32 %v200_v20, 0.0  ;;  %880 = vmatpush3.bf16.msra.mxu0 %v946_v13  ;;  %v1241_v27 = vld [vmem:[%s1343_s4] ss:$0 sm:$0xff] }
  0xdf   :  { %v164_v33 = vadd.f32 %v163_v30, %v1184_v55  ;;  %421 = vmatprep.mubr.bf16.mxu1 %v235_v28  ;;  %v215_v40 = vmax.f32 %v162_v32, 0.0  ;;  %881 = vmatprep.subr.bf16.mxu0 %v1001_v41 }
  0xe0   :  { %v165_v35 = vpop.f32.mrf.mxu0  ;;  %422 = vmatmul.mubr.bf16.gmra.mxu1 %v234_v29  ;;  %v204_v36 = vpop.f32.mrf.mxu1  ;;  %v231_v59 = vmax.f32 %v202_v16, 0.0 }
  0xe1   :  { %v166_v37 = vadd.f32 %v165_v35, %v1182_v54  ;;  %v216_v38 = vmax.f32 %v164_v33, 0.0 }
  0xe2   :  { %v169_v39 = vpop.f32.mrf.mxu0  ;;  %v245_v21 = vpack.c.bf16 %v231_v59, %v231_v59 }
  0xe3   :  { %v217_v42 = vmax.f32 %v166_v37, 0.0  ;;  %v236_v48 = vpack.c.bf16 %v216_v38, %v214_v43  ;;  %v170_v52 = vadd.f32 %v169_v39, %v1184_v55 }
  0xe4   :  { %v171_v44 = vpop.f32.mrf.mxu0 }
  0xe5   :  { %v237_v45 = vpack.c.bf16 %v217_v42, %v215_v40  ;;  %v172_v50 = vadd.f32 %v171_v44, %v1182_v54  ;;  %v218_v1 = vmax.f32 %v170_v52, 0.0 }
  0xe6   :  { %v173_v49 = vpop.f32.mrf.mxu0 }
  0xe7   :  { %v174_v51 = vadd.f32 %v173_v49, %v1184_v55  ;;  %429 = vmatprep.mubr.bf16.mxu1 %v237_v45  ;;  %v219_v63 = vmax.f32 %v172_v50, 0.0  ;;  %v947_v55 = vld [vmem:[%s1341_s5] sm:$0xff]  }
  0xe8   :  { %v175_v56 = vpop.f32.mrf.mxu0  ;;  %430 = vmatmul.mubr.bf16.gmra.mxu1 %v236_v48  ;;  %882 = vmatpush3.bf16.msra.mxu0 %v947_v55 }
  0xe9   :  { %v176_v60 = vadd.f32 %v175_v56, %v1182_v54  ;;  %v220_v62 = vmax.f32 %v174_v51, 0.0  ;;  %v244_v54 = vpack.c.bf16 %v230_v24, %v230_v24 }
  0xeb   :  { %v221_v57 = vmax.f32 %v176_v60, 0.0  ;;  %v238_v7 = vpack.c.bf16 %v220_v62, %v218_v1 }
  0xed   :  { %v239_v0 = vpack.c.bf16 %v221_v57, %v219_v63 }
  0xef   :  { %437 = vmatprep.mubr.bf16.mxu1 %v239_v0 }
  0xf0   :  { %438 = vmatmul.mubr.bf16.gmra.mxu1 %v238_v7 }
  0xf1   :  { %445 = vmatprep.mubr.bf16.mxu1 %v241_v2 }
  0xf8   :  { %446 = vmatmul.mubr.bf16.gmra.mxu1 %v240_v9 }
  0xf9   :  { %453 = vmatprep.mubr.bf16.mxu1 %v243_v15 }
 0x100   :  { %454 = vmatmul.mubr.bf16.gmra.mxu1 %v242_v23 }
 0x101   :  { %461 = vmatprep.mubr.bf16.mxu1 %v245_v21 }
 0x108   :  { %462 = vmatmul.mubr.bf16.gmra.mxu1 %v244_v54 }
 0x198   :  { %v810_v22 = vpop.f32.mrf.mxu1 }
 0x19a   :  { %v811_v25 = vpop.f32.mrf.mxu1 }
 0x19b   :  { %v812_v26 = vadd.f32 %v811_v25, %v810_v22 }
 0x19c   :  { %v813_v28 = vpop.f32.mrf.mxu1 }
 0x19d   :  { %v416_v30 = vadd.f32 %v812_v26, %v1241_v27 }
 0x19e   :  { %v814_v29 = vpop.f32.mrf.mxu1 }
 0x19f   :  { %v815_v31 = vadd.f32 %v814_v29, %v813_v28  ;;  %v469_v35 = vmax.f32 %v416_v30, 0.0 }
 0x1a0   :  { %v816_v32 = vpop.f32.mrf.mxu1 }
 0x1a1   :  { %v419_v33 = vadd.f32 %v815_v31, %v1241_v27 }
 0x1a2   :  { %v817_v34 = vpop.f32.mrf.mxu1 }
 0x1a3   :  { %v470_v36 = vmax.f32 %v419_v33, 0.0  ;;  %v818_v37 = vadd.f32 %v817_v34, %v816_v32 }
 0x1a4   :  { %v819_v38 = vpop.f32.mrf.mxu1 }
 0x1a5   :  { %v482_v39 = vpack.c.bf16 %v470_v36, %v469_v35  ;;  %v424_v42 = vadd.f32 %v818_v37, %v1241_v27  ;;  %v1271_v37 = vld [vmem:[%s1344_s6] ss:$0 sm:$0xff] }
 0x1a6   :  { %v820_v40 = vpop.f32.mrf.mxu1 }
 0x1a7   :  { %v821_v43 = vadd.f32 %v820_v40, %v819_v38  ;;  %884 = vmatmul.mubr.bf16.vlgmr.msra.gmra.mxu0 %v482_v39  ;;  %v471_v47 = vmax.f32 %v424_v42, 0.0 }
 0x1a8   :  { %v822_v44 = vpop.f32.mrf.mxu1  ;;  %887 = vmatprep.mubr.msk.bf16.mxu0 %vm1002_vm1, %v1001_v41 }
 0x1a9   :  { %v427_v45 = vadd.f32 %v821_v43, %v1241_v27 }
 0x1aa   :  { %v823_v46 = vpop.f32.mrf.mxu1 }
 0x1ab   :  { %v472_v48 = vmax.f32 %v427_v45, 0.0  ;;  %v824_v49 = vadd.f32 %v823_v46, %v822_v44 }
 0x1ac   :  { %v825_v50 = vpop.f32.mrf.mxu1 }
 0x1ad   :  { %v483_v51 = vpack.c.bf16 %v472_v48, %v471_v47  ;;  %v432_v56 = vadd.f32 %v824_v49, %v1241_v27 }
 0x1ae   :  { %v826_v52 = vpop.f32.mrf.mxu1 }
 0x1af   :  { %v827_v58 = vadd.f32 %v826_v52, %v825_v50  ;;  %888 = vmatmul.mubr.bf16.gmra.mxu0 %v483_v51  ;;  %v473_v63 = vmax.f32 %v432_v56, 0.0 }
 0x1b0   :  { %v828_v60 = vpop.f32.mrf.mxu1  ;;  %891 = vmatprep.mubr.msk.bf16.mxu0 %vm1002_vm1, %v1001_v41 }
 0x1b1   :  { %v435_v61 = vadd.f32 %v827_v58, %v1241_v27 }
 0x1b2   :  { %v829_v62 = vpop.f32.mrf.mxu1 }
 0x1b3   :  { %v474_v57 = vmax.f32 %v435_v61, 0.0  ;;  %v830_v1 = vadd.f32 %v829_v62, %v828_v60 }
 0x1b4   :  { %v831_v0 = vpop.f32.mrf.mxu1 }
 0x1b5   :  { %v484_v2 = vpack.c.bf16 %v474_v57, %v473_v63  ;;  %v440_v5 = vadd.f32 %v830_v1, %v1241_v27 }
 0x1b6   :  { %v832_v3 = vpop.f32.mrf.mxu1 }
 0x1b7   :  { %v833_v6 = vadd.f32 %v832_v3, %v831_v0  ;;  %892 = vmatmul.mubr.bf16.gmra.mxu0 %v484_v2  ;;  %v475_v11 = vmax.f32 %v440_v5, 0.0 }
 0x1b8   :  { %v834_v7 = vpop.f32.mrf.mxu1  ;;  %895 = vmatprep.mubr.msk.bf16.mxu0 %vm1002_vm1, %v1001_v41 }
 0x1b9   :  { %v443_v8 = vadd.f32 %v833_v6, %v1241_v27 }
 0x1ba   :  { %v835_v10 = vpop.f32.mrf.mxu1 }
 0x1bb   :  { %v476_v12 = vmax.f32 %v443_v8, 0.0  ;;  %v836_v14 = vadd.f32 %v835_v10, %v834_v7 }
 0x1bc   :  { %v837_v15 = vpop.f32.mrf.mxu1 }
 0x1bd   :  { %v485_v16 = vpack.c.bf16 %v476_v12, %v475_v11  ;;  %v448_v17 = vadd.f32 %v836_v14, %v1241_v27 }
 0x1be   :  { %v838_v9 = vpop.f32.mrf.mxu1 }
 0x1bf   :  { %v839_v53 = vadd.f32 %v838_v9, %v837_v15  ;;  %896 = vmatmul.mubr.bf16.gmra.mxu0 %v485_v16  ;;  %v477_v20 = vmax.f32 %v448_v17, 0.0 }
 0x1c0   :  { %v840_v59 = vpop.f32.mrf.mxu1  ;;  %899 = vmatprep.mubr.msk.bf16.mxu0 %vm1002_vm1, %v1001_v41 }
 0x1c1   :  { %v451_v18 = vadd.f32 %v839_v53, %v1241_v27 }
 0x1c2   :  { %v841_v19 = vpop.f32.mrf.mxu1 }
 0x1c3   :  { %v478_v21 = vmax.f32 %v451_v18, 0.0  ;;  %v842_v23 = vadd.f32 %v841_v19, %v840_v59 }
 0x1c4   :  { %v843_v24 = vpop.f32.mrf.mxu1 }
 0x1c5   :  { %v486_v54 = vpack.c.bf16 %v478_v21, %v477_v20  ;;  %v456_v13 = vadd.f32 %v842_v23, %v1241_v27 }
 0x1c6   :  { %v844_v4 = vpop.f32.mrf.mxu1 }
 0x1c7   :  { %v845_v55 = vadd.f32 %v844_v4, %v843_v24  ;;  %900 = vmatmul.mubr.bf16.gmra.mxu0 %v486_v54  ;;  %v479_v28 = vmax.f32 %v456_v13, 0.0 }
 0x1c8   :  { %v846_v22 = vpop.f32.mrf.mxu1  ;;  %903 = vmatprep.mubr.msk.bf16.mxu0 %vm1002_vm1, %v1001_v41 }
 0x1c9   :  { %v459_v25 = vadd.f32 %v845_v55, %v1241_v27 }
 0x1ca   :  { %v847_v26 = vpop.f32.mrf.mxu1 }
 0x1cb   :  { %v480_v29 = vmax.f32 %v459_v25, 0.0  ;;  %v848_v30 = vadd.f32 %v847_v26, %v846_v22 }
 0x1cc   :  { %v849_v31 = vpop.f32.mrf.mxu1 }
 0x1cd   :  { %v464_v32 = vadd.f32 %v848_v30, %v1241_v27  ;;  %v487_v33 = vpack.c.bf16 %v480_v29, %v479_v28 }
 0x1ce   :  { %v850_v34 = vpop.f32.mrf.mxu1 }
 0x1cf   :  { %904 = vmatmul.mubr.bf16.gmra.mxu0 %v487_v33  ;;  %v481_v35 = vmax.f32 %v464_v32, 0.0 }
 0x1d0   :  { %907 = vmatprep.mubr.msk.bf16.mxu0 %vm1002_vm1, %v1001_v41 }
 0x1d1   :  { %v488_v36 = vpack.c.bf16 %v481_v35, %v481_v35 }
 0x1d7   :  { %908 = vmatmul.mubr.bf16.gmra.mxu0 %v488_v36 }
 0x267   :  { %v594_v38 = vpop.f32.mrf.mxu0 }
 0x268   :  { %v595_v39 = vadd.f32 %v1271_v37, %v594_v38 }
 0x269   :  { %v885_v40 = vpop.f32.mrf.mxu0 }
 0x26a   :  { %v781_v42 = vmul.f32 -1.442695, %v595_v39 }
 0x26b   :  { %v597_v27 = vpop.f32.mrf.mxu0 }
 0x26c   :  { %948 = vpow2.f32 %v781_v42  ;;  %v598_v43 = vadd.f32 %v1271_v37, %v597_v27 }
 0x26d   :  { %v886_v44 = vpop.f32.mrf.mxu0 }
 0x26e   :  { %v782_v45 = vmul.f32 -1.442695, %v598_v43 }
 0x26f   :  { %v602_v41 = vpop.f32.mrf.mxu0 }
 0x270   :  { %950 = vpow2.f32 %v782_v45  ;;  %v603_v46 = vadd.f32 %v1271_v37, %v602_v41 }
 0x271   :  { %v889_v47 = vpop.f32.mrf.mxu0 }
 0x272   :  { %v783_v48 = vmul.f32 -1.442695, %v603_v46 }
 0x273   :  { %v605_v49 = vpop.f32.mrf.mxu0 }
 0x274   :  { %952 = vpow2.f32 %v783_v48  ;;  %v606_v50 = vadd.f32 %v1271_v37, %v605_v49 }
 0x275   :  { %v890_v51 = vpop.f32.mrf.mxu0 }
 0x276   :  { %v784_v52 = vmul.f32 -1.442695, %v606_v50 }
 0x277   :  { %v610_v56 = vpop.f32.mrf.mxu0 }
 0x278   :  { %954 = vpow2.f32 %v784_v52  ;;  %v611_v58 = vadd.f32 %v1271_v37, %v610_v56 }
 0x279   :  { %v949_v60 = vpop.eup %948  ;;  %v893_v61 = vpop.f32.mrf.mxu0 }
 0x27a   :  { %v687_v62 = vadd.f32 1.0, %v949_v60  ;;  %v785_v63 = vmul.f32 -1.442695, %v611_v58 }
 0x27b   :  { %v613_v57 = vpop.f32.mrf.mxu0 }
 0x27c   :  { %956 = vrcp.f32 %v687_v62  ;;  %v614_v1 = vadd.f32 %v1271_v37, %v613_v57 }
 0x27d   :  { %v951_v0 = vpop.eup %950  ;;  %958 = vpow2.f32 %v785_v63  ;;  %v894_v2 = vpop.f32.mrf.mxu0 }
 0x27e   :  { %v688_v3 = vadd.f32 1.0, %v951_v0  ;;  %v786_v5 = vmul.f32 -1.442695, %v614_v1 }
 0x27f   :  { %v618_v6 = vpop.f32.mrf.mxu0 }
 0x280   :  { %960 = vrcp.f32 %v688_v3  ;;  %v619_v7 = vadd.f32 %v1271_v37, %v618_v6 }
 0x281   :  { %v953_v8 = vpop.eup %952  ;;  %962 = vpow2.f32 %v786_v5  ;;  %v897_v10 = vpop.f32.mrf.mxu0 }
 0x282   :  { %v689_v11 = vadd.f32 1.0, %v953_v8  ;;  %v787_v12 = vmul.f32 -1.442695, %v619_v7 }
 0x283   :  { %v621_v14 = vpop.f32.mrf.mxu0 }
 0x284   :  { %964 = vrcp.f32 %v689_v11  ;;  %v622_v15 = vadd.f32 %v1271_v37, %v621_v14 }
 0x285   :  { %v955_v16 = vpop.eup %954  ;;  %966 = vpow2.f32 %v787_v12  ;;  %v898_v9 = vpop.f32.mrf.mxu0 }
 0x286   :  { %v690_v17 = vadd.f32 1.0, %v955_v16  ;;  %v788_v53 = vmul.f32 -1.442695, %v622_v15 }
 0x287   :  { %v626_v59 = vpop.f32.mrf.mxu0 }
 0x288   :  { %968 = vrcp.f32 %v690_v17  ;;  %v627_v18 = vadd.f32 %v1271_v37, %v626_v59 }
 0x289   :  { %v957_v19 = vpop.eup %956  ;;  %970 = vpow2.f32 %v788_v53  ;;  %v901_v20 = vpop.f32.mrf.mxu0 }
 0x28a   :  { %v959_v21 = vpop.eup %958  ;;  %727 = vst.msk [vmem:[%s1345_s7] sm:$0xff] %vm726_vm2, %v957_v19  ;;  %v789_v23 = vmul.f32 -1.442695, %v627_v18 }
 0x28b   :  { %v691_v24 = vadd.f32 1.0, %v959_v21  ;;  %v629_v54 = vpop.f32.mrf.mxu0 }
 0x28c   :  { %972 = vpow2.f32 %v789_v23  ;;  %v630_v4 = vadd.f32 %v1271_v37, %v629_v54 }
 0x28d   :  { %v961_v13 = vpop.eup %960  ;;  %974 = vrcp.f32 %v691_v24  ;;  %v902_v55 = vpop.f32.mrf.mxu0 }
 0x28e   :  { %v963_v22 = vpop.eup %962  ;;  %728 = vst.msk [vmem:[%s1345_s7 + $0x8] sm:$0xff] %vm726_vm2, %v961_v13  ;;  %v790_v25 = vmul.f32 -1.442695, %v630_v4 }
 0x28f   :  { %v692_v26 = vadd.f32 1.0, %v963_v22  ;;  %v634_v28 = vpop.f32.mrf.mxu0 }
 0x290   :  { %976 = vpow2.f32 %v790_v25  ;;  %v635_v29 = vadd.f32 %v1271_v37, %v634_v28 }
 0x291   :  { %v965_v30 = vpop.eup %964  ;;  %978 = vrcp.f32 %v692_v26  ;;  %v905_v31 = vpop.f32.mrf.mxu0 }
 0x292   :  { %v967_v32 = vpop.eup %966  ;;  %729 = vst.msk [vmem:[%s1345_s7 + $0x10] sm:$0xff] %vm726_vm2, %v965_v30  ;;  %v791_v33 = vmul.f32 -1.442695, %v635_v29 }
 0x293   :  { %v693_v34 = vadd.f32 1.0, %v967_v32  ;;  %v637_v35 = vpop.f32.mrf.mxu0 }
 0x294   :  { %980 = vpow2.f32 %v791_v33  ;;  %v638_v36 = vadd.f32 %v1271_v37, %v637_v35 }
 0x295   :  { %v969_v38 = vpop.eup %968  ;;  %982 = vrcp.f32 %v693_v34  ;;  %v906_v39 = vpop.f32.mrf.mxu0 }
 0x296   :  { %v971_v40 = vpop.eup %970  ;;  %730 = vst.msk [vmem:[%s1345_s7 + $0x18] sm:$0xff] %vm726_vm2, %v969_v38  ;;  %v792_v42 = vmul.f32 -1.442695, %v638_v36 }
 0x297   :  { %v694_v27 = vadd.f32 1.0, %v971_v40  ;;  %v642_v43 = vpop.f32.mrf.mxu0 }
 0x298   :  { %984 = vpow2.f32 %v792_v42  ;;  %v643_v44 = vadd.f32 %v1271_v37, %v642_v43 }
 0x299   :  { %v973_v45 = vpop.eup %972  ;;  %986 = vrcp.f32 %v694_v27  ;;  %v909_v41 = vpop.f32.mrf.mxu0 }
 0x29a   :  { %v975_v46 = vpop.eup %974  ;;  %v695_v47 = vadd.f32 1.0, %v973_v45  ;;  %v793_v48 = vmul.f32 -1.442695, %v643_v44 }
 0x29b   :  { %731 = vst.msk [vmem:[%s1345_s7 + $0x20] sm:$0xff] %vm726_vm2, %v975_v46  ;;  %v645_v49 = vpop.f32.mrf.mxu0 }
 0x29c   :  { %988 = vrcp.f32 %v695_v47 }
 0x29d   :  { %v977_v50 = vpop.eup %976  ;;  %990 = vpow2.f32 %v793_v48  ;;  %v910_v51 = vpop.f32.mrf.mxu0 }
 0x29e   :  { %v979_v52 = vpop.eup %978  ;;  %v696_v56 = vadd.f32 1.0, %v977_v50 }
 0x29f   :  { %732 = vst.msk [vmem:[%s1345_s7 + $0x28] sm:$0xff] %vm726_vm2, %v979_v52 }
 0x2a0   :  { %992 = vrcp.f32 %v696_v56 }
 0x2a1   :  { %v981_v37 = vpop.eup %980 }
 0x2a2   :  { %v983_v58 = vpop.eup %982  ;;  %v697_v60 = vadd.f32 1.0, %v981_v37 }
 0x2a3   :  { %733 = vst.msk [vmem:[%s1345_s7 + $0x30] sm:$0xff] %vm726_vm2, %v983_v58 }
 0x2a4   :  { %994 = vrcp.f32 %v697_v60 }
 0x2a5   :  { %v985_v61 = vpop.eup %984 }
 0x2a6   :  { %v987_v62 = vpop.eup %986  ;;  %v698_v63 = vadd.f32 1.0, %v985_v61 }
 0x2a7   :  { %734 = vst.msk [vmem:[%s1345_s7 + $0x38] sm:$0xff] %vm726_vm2, %v987_v62 }
 0x2a8   :  { %996 = vrcp.f32 %v698_v63 }
 0x2a9   :  { %v989_v57 = vpop.eup %988 }
 0x2aa   :  { %v991_v1 = vpop.eup %990  ;;  %735 = vst.msk [vmem:[%s1345_s7 + $0x40] sm:$0xff] %vm726_vm2, %v989_v57 }
 0x2ab   :  { %v699_v0 = vadd.f32 1.0, %v991_v1 }
 0x2ad   :  { %v993_v2 = vpop.eup %992  ;;  %998 = vrcp.f32 %v699_v0 }
 0x2ae   :  { %736 = vst.msk [vmem:[%s1345_s7 + $0x48] sm:$0xff] %vm726_vm2, %v993_v2 }
 0x2b1   :  { %v995_v3 = vpop.eup %994 }
 0x2b2   :  { %737 = vst.msk [vmem:[%s1345_s7 + $0x50] sm:$0xff] %vm726_vm2, %v995_v3 }
 0x2b5   :  { %v997_v5 = vpop.eup %996 }
 0x2b6   :  { %738 = vst.msk [vmem:[%s1345_s7 + $0x58] sm:$0xff] %vm726_vm2, %v997_v5 }
 0x2ba   :  { %v999_v6 = vpop.eup %998 }
 0x2bb   :  { %739 = vst.msk [vmem:[%s1345_s7 + $0x60] sm:$0xff] %vm726_vm2, %v999_v6 }

</bundles_post_ra>
